<compile_context>
chip_gen: v6e
topology: v6e:2x2x1
jax: 0.10.0
libtpu: 0.0.40
codegen_flags: <defaults>
</compile_context>

<pallas_src>
import functools

import jax
import jax.numpy as jnp
from jax import lax
from jax.experimental import pallas as pl
from jax.experimental.pallas import tpu as pltpu

_LANES = 128
_SUBLANES = 8
_MAX_TILE_ROWS = 4096   # 2 MiB per f32 input block -> 8 MiB double-buffered, fits all gens.
_SMALL_B = 65536        # below this, plain fused XLA beats kernel overhead.


def _twl_kernel(yp_ref, yt_ref, o_ref, ramp_ref, *, w_step, rows_arr, needs_mask):
    """Accumulate weighted squared error of one (tile_rows, 128) tile into o_ref (8, 128)."""
    t = pl.program_id(0)
    tile_rows, lanes = yp_ref.shape

    @pl.when(t == 0)
    def _init():
        o_ref[...] = jnp.zeros_like(o_ref)
        # ramp[r, c] = (r * 128 + c) * w_step ; values < tile_rows*128 <= 2^19, exact in f32.
        r = lax.broadcasted_iota(jnp.int32, (tile_rows, lanes), 0)
        c = lax.broadcasted_iota(jnp.int32, (tile_rows, lanes), 1)
        ramp_ref[...] = (r * lanes + c).astype(jnp.float32) * jnp.float32(w_step)

    # weight = 1 + global_idx * w_step = w_base + ramp, with w_base a per-step scalar.
    base_row = t * tile_rows
    w_base = jnp.float32(1.0) + base_row.astype(jnp.float32) * jnp.float32(lanes * w_step)

    d = yp_ref[...].astype(jnp.float32) - yt_ref[...].astype(jnp.float32)
    contrib = (w_base + ramp_ref[...]) * d * d

    def fold(x):
        # Collapse the tile onto one (8, 128) vreg footprint with pure VPU adds
        # (layout-preserving reshape; the single cross-lane reduce happens in the wrapper).
        return jnp.sum(x.reshape(tile_rows // _SUBLANES, _SUBLANES, lanes), axis=0)

    if needs_mask:
        is_last = t == pl.num_programs(0) - 1

        @pl.when(jnp.logical_not(is_last))
        def _hot():
            o_ref[...] += fold(contrib)

        @pl.when(is_last)
        def _masked():
            # Rows past the real array extent are out-of-bounds reads (unspecified data):
            # select 0 for them.  Padded-but-in-bounds entries are zeros in both inputs.
            row_idx = base_row + lax.broadcasted_iota(jnp.int32, (tile_rows, lanes), 0)
            o_ref[...] += fold(jnp.where(row_idx < rows_arr, contrib, 0.0))
    else:
        o_ref[...] += fold(contrib)


def _reference_loss(y_pred, y_true):
    b = y_pred.shape[0]
    w = jnp.linspace(1.0, 2.0, b, dtype=jnp.float32)
    d = y_pred.astype(jnp.float32) - y_true.astype(jnp.float32)
    return jnp.mean(w * d * d)


def time_weighted_loss(y_pred, y_true, *, min_pallas_elems=_SMALL_B):
    """Pallas TPU implementation of TimeWeightedLoss.forward for 1-D inputs of shape (B,)."""
    assert y_pred.shape == y_true.shape and y_pred.ndim == 1
    b = y_pred.shape[0]
    assert b >= 1

    # Small-B fast path: a single fused XLA expression is strictly faster than a kernel launch.
    if b < min_pallas_elems:
        return _reference_loss(y_pred, y_true)

    # torch.linspace(1, 2, B): step = 1/(B-1).
    w_step = 1.0 / (b - 1)

    # Stream in the native floating dtype (bf16 stays bf16 -> half the HBM bytes).
    stream_dtype = jnp.result_type(y_pred.dtype, y_true.dtype)
    if stream_dtype not in (jnp.dtype(jnp.bfloat16), jnp.dtype(jnp.float32)):
        stream_dtype = jnp.dtype(jnp.float32)
    yp = y_pred.astype(stream_dtype)
    yt = y_true.astype(stream_dtype)

    # Lane-dense (rows, 128) layout.  Multiple-of-128 B -> free reshape, no copy.
    rows_arr = -(-b // _LANES)
    if b % _LANES:
        pad = rows_arr * _LANES - b   # at most 127 elements; padded tail is zero in both inputs
        yp = jnp.pad(yp, (0, pad))
        yt = jnp.pad(yt, (0, pad))
    yp = yp.reshape(rows_arr, _LANES)
    yt = yt.reshape(rows_arr, _LANES)

    # Tile height derived from the actual row count (no power-of-two over-padding).
    sub = _SUBLANES if jnp.dtype(stream_dtype).itemsize == 4 else 2 * _SUBLANES
    tile_rows = min(_MAX_TILE_ROWS, -(-rows_arr // sub) * sub)
    n_tiles = -(-rows_arr // tile_rows)
    needs_mask = (rows_arr % tile_rows) != 0

    kernel = functools.partial(
        _twl_kernel, w_step=w_step, rows_arr=rows_arr, needs_mask=needs_mask)

    in_spec = pl.BlockSpec((tile_rows, _LANES), lambda t: (t, 0))

    partials = pl.pallas_call(
        kernel,
        out_shape=jax.ShapeDtypeStruct((_SUBLANES, _LANES), jnp.float32),
        grid_spec=pltpu.PrefetchScalarGridSpec(
            num_scalar_prefetch=0,
            grid=(n_tiles,),
            in_specs=[in_spec, in_spec],
            out_specs=pl.BlockSpec((_SUBLANES, _LANES), lambda t: (0, 0)),
            scratch_shapes=[pltpu.VMEM((tile_rows, _LANES), jnp.float32)],
        ),
        compiler_params=pltpu.CompilerParams(dimension_semantics=("arbitrary",)),
    )(yp, yt)

    # Tiny final reduction (8 * 128 f32) + mean normalization by the true B in plain JAX.
    return jnp.sum(partials) / jnp.float32(b)


if __name__ == "__main__":
    key = jax.random.PRNGKey(0)

    def _check(b, rtol, min_pallas_elems=_SMALL_B):
        k1, k2 = jax.random.split(jax.random.fold_in(key, b))
        y_pred = jax.random.normal(k1, (b,), dtype=jnp.float32)
        y_true = jax.random.normal(k2, (b,), dtype=jnp.float32)
        loss = jax.block_until_ready(
            time_weighted_loss(y_pred, y_true, min_pallas_elems=min_pallas_elems))
        w = jnp.linspace(1.0, 2.0, b, dtype=jnp.float32)
        ref = jnp.mean(w * (y_pred - y_true) ** 2)
        assert jnp.allclose(loss, ref, rtol=rtol, atol=1e-6), (b, loss, ref)

    # Small batch (natural module usage) -> fused fast path.
    _check(8, rtol=1e-6)
    # Small kernel-path case (forced): B % 128 == 0 -> free reshape, single tile, no mask.
    _check(9_216, rtol=1e-5, min_pallas_elems=1)
    # Ragged B -> minimal pad to next multiple of 128 + masked (partial) last block.
    _check(200_003, rtol=1e-4)
    # Multi-tile pipelined reduction (2 grid steps) + masked last block.
    _check(600_000, rtol=1e-4)

    print("KERNEL_OK")
</pallas_src>

<mosaic_0001>
module attributes {stable_mosaic.version = 11 : i64} {
  func.func @_twl_kernel(%arg0: i32, %arg1: memref<72x128xf32, #tpu.memory_space<vmem>>, %arg2: memref<72x128xf32, #tpu.memory_space<vmem>>, %arg3: memref<8x128xf32, #tpu.memory_space<vmem>>, %arg4: memref<72x128xf32, #tpu.memory_space<vmem>>) attributes {dimension_semantics = [#tpu.dimension_semantics<arbitrary>], iteration_bounds = array<i64: 1>, scalar_prefetch = 0 : i64, scratch_operands = 1 : i64, tpu.core_type = #tpu.core_type<tc>, window_params = [{transform_indices = @transform_0, window_bounds = array<i64: 72, 128>}, {transform_indices = @transform_1, window_bounds = array<i64: 72, 128>}, {pipeline_mode = #tpu.pipeline_mode<synchronous>, transform_indices = @transform_2, window_bounds = array<i64: 8, 128>}]} {
    %c0_i32 = arith.constant 0 : i32
    %0 = arith.cmpi eq, %arg0, %c0_i32 : i32
    %1 = arith.extui %0 : i1 to i32
    %c0_i32_0 = arith.constant 0 : i32
    %2 = arith.cmpi ne, %1, %c0_i32_0 : i32
    scf.if %2 {
      %cst_12 = arith.constant 0.000000e+00 : f32
      %20 = vector.broadcast %cst_12 : f32 to vector<8x128xf32>
      %c0_13 = arith.constant 0 : index
      %c0_14 = arith.constant 0 : index
      %21 = vector.load %arg3[%c0_13, %c0_14] : memref<8x128xf32, #tpu.memory_space<vmem>>, vector<8x128xf32>
      tpu.vector_store %arg3[%c0_13, %c0_14], %20 {strides = array<i32>} : memref<8x128xf32, #tpu.memory_space<vmem>>, vector<8x128xf32>,
      %22 = tpu.iota {dimensions = array<i32: 0>} : vector<72x128xi32>
      %23 = tpu.iota {dimensions = array<i32: 1>} : vector<72x128xi32>
      %c128_i32 = arith.constant 128 : i32
      %24 = vector.broadcast %c128_i32 : i32 to vector<72x128xi32>
      %25 = arith.muli %22, %24 : vector<72x128xi32>
      %26 = arith.addi %25, %23 : vector<72x128xi32>
      %27 = arith.sitofp %26 : vector<72x128xi32> to vector<72x128xf32>
      %cst_15 = arith.constant 1.08518718E-4 : f32
      %28 = vector.broadcast %cst_15 : f32 to vector<72x128xf32>
      %29 = arith.mulf %27, %28 : vector<72x128xf32>
      %c0_16 = arith.constant 0 : index
      %c0_17 = arith.constant 0 : index
      %30 = vector.load %arg4[%c0_16, %c0_17] : memref<72x128xf32, #tpu.memory_space<vmem>>, vector<72x128xf32>
      tpu.vector_store %arg4[%c0_16, %c0_17], %29 {strides = array<i32>} : memref<72x128xf32, #tpu.memory_space<vmem>>, vector<72x128xf32>,
    } else {
    }
    %c72_i32 = arith.constant 72 : i32
    %3 = arith.muli %arg0, %c72_i32 : i32
    %4 = arith.sitofp %3 : i32 to f32
    %cst = arith.constant 0.0138903959 : f32
    %5 = arith.mulf %4, %cst : f32
    %cst_1 = arith.constant 1.000000e+00 : f32
    %6 = arith.addf %cst_1, %5 : f32
    %c0 = arith.constant 0 : index
    %c0_2 = arith.constant 0 : index
    %7 = vector.load %arg1[%c0, %c0_2] : memref<72x128xf32, #tpu.memory_space<vmem>>, vector<72x128xf32>
    %c0_3 = arith.constant 0 : index
    %c0_4 = arith.constant 0 : index
    %8 = vector.load %arg2[%c0_3, %c0_4] : memref<72x128xf32, #tpu.memory_space<vmem>>, vector<72x128xf32>
    %9 = arith.subf %7, %8 : vector<72x128xf32>
    %c0_5 = arith.constant 0 : index
    %c0_6 = arith.constant 0 : index
    %10 = vector.load %arg4[%c0_5, %c0_6] : memref<72x128xf32, #tpu.memory_space<vmem>>, vector<72x128xf32>
    %11 = vector.broadcast %6 : f32 to vector<72x128xf32>
    %12 = arith.addf %11, %10 : vector<72x128xf32>
    %13 = arith.mulf %12, %9 : vector<72x128xf32>
    %14 = arith.mulf %13, %9 : vector<72x128xf32>
    %c0_7 = arith.constant 0 : index
    %c0_8 = arith.constant 0 : index
    %15 = vector.load %arg3[%c0_7, %c0_8] : memref<8x128xf32, #tpu.memory_space<vmem>>, vector<8x128xf32>
    %16 = vector.shape_cast %14 : vector<72x128xf32> to vector<9x8x128xf32>
    %cst_9 = arith.constant dense<0.000000e+00> : vector<8x128xf32>
    %17 = vector.multi_reduction <add>, %16, %cst_9 [0] : vector<9x8x128xf32> to vector<8x128xf32>
    %18 = arith.addf %15, %17 : vector<8x128xf32>
    %c0_10 = arith.constant 0 : index
    %c0_11 = arith.constant 0 : index
    %19 = vector.load %arg3[%c0_10, %c0_11] : memref<8x128xf32, #tpu.memory_space<vmem>>, vector<8x128xf32>
    tpu.vector_store %arg3[%c0_10, %c0_11], %18 {strides = array<i32>} : memref<8x128xf32, #tpu.memory_space<vmem>>, vector<8x128xf32>,
    return
  }
  func.func @transform_0(%arg0: i32) -> (i32, i32) {
    %c0_i32 = arith.constant 0 : i32
    %c0_i32_0 = arith.constant 0 : i32
    return %arg0, %c0_i32 : i32, i32
  }
  func.func @transform_1(%arg0: i32) -> (i32, i32) {
    %c0_i32 = arith.constant 0 : i32
    %c0_i32_0 = arith.constant 0 : i32
    return %arg0, %c0_i32 : i32, i32
  }
  func.func @transform_2(%arg0: i32) -> (i32, i32) {
    %c0_i32 = arith.constant 0 : i32
    %c0_i32_0 = arith.constant 0 : i32
    %c0_i32_1 = arith.constant 0 : i32
    return %c0_i32, %c0_i32_0 : i32, i32
  }
}

</mosaic_0001>

<bundles_post_ra>
// kernel: tpu_custom_call.1
= control target key start
LH: loop header
LB: loop body
LE: loop exit
PB: predicated region body
PF: predicated region fallthrough
CT: control target
= control target key end

     0   :  { %7 = vsyncpa [#allocation4], 0  ;;  %s298_s0 = inlined_call_operand.hbm [shape: f32[72,128], index: 0, kind: input, shape index: {}]   ;;  %s299_s1 = inlined_call_operand.hbm [shape: f32[72,128], index: 1, kind: input, shape index: {}]   ;;  %s300_s2 = inlined_call_operand.hbm [shape: f32[8,128], index: 2, kind: output, shape index: {}]  }
   0x1   :  { %8 = vsyncpa [#allocation7], 0 }
   0x2   :  { %9 = vsyncpa [#allocation5], 0  ;;  %s269_s9 = smov [#allocation3]  }
   0x3   :  { %s15_s10 = sshll.u32 %s269_s9, 4  ;;  %s16_s10 = int_to_ptr.vmem [resolvable:$true] %s15_s10 }
   0x4   :  { %s211_s11 = scalar_lea.vmem %s16_s10, 1152  ;;  %p216_p1 = scmp.lt.s32.totalorder %s16_s10, %s16_s10 }
   0x5   :  { %p212_p0 = scmp.ne.s32.totalorder %s16_s10, %s211_s11  ;;  %p217_p2 = scmp.lt.s32.totalorder %s211_s11, %s211_s11 }
   0x7   :  { %p218_p3 = por %p217_p2, %p216_p1 }
   0x9   :  { %p219_p4 = pnand %p218_p3, %p212_p0 }
   0xb   :  { %222 = shalt.err (!%p219_p4)
}
   0xc   :  { %s270_s12 = smov 128   ;;  %s271_s13 = smov 8  }
   0xd   :  { %21 = dma.hbm_to_vmem [thread:$0]  %s298_s0, 1152, %s16_s10, [#allocation4], %s270_s12, %s270_s12, %s271_s13  }
   0xe   :  { %s272_s16 = smov [#allocation6]  }
   0xf   :  { %s27_s17 = sshll.u32 %s272_s16, 4  ;;  %s28_s17 = int_to_ptr.vmem [resolvable:$true] %s27_s17 }
  0x10   :  { %s231_s18 = scalar_lea.vmem %s28_s17, 1152  ;;  %p236_p6 = scmp.lt.s32.totalorder %s28_s17, %s28_s17 }
  0x11   :  { %p232_p5 = scmp.ne.s32.totalorder %s28_s17, %s231_s18  ;;  %p237_p7 = scmp.lt.s32.totalorder %s231_s18, %s231_s18 }
  0x13   :  { %p238_p8 = por %p237_p7, %p236_p6 }
  0x15   :  { %p239_p9 = pnand %p238_p8, %p232_p5 }
  0x17   :  { %242 = shalt.err (!%p239_p9)
}
  0x18   :  { %33 = dma.hbm_to_vmem [thread:$0]  %s299_s1, 1152, %s28_s17, [#allocation7], %s270_s12, %s270_s12, %s271_s13  }
  0x19   :  { %263 = dma.done.wait [#allocation4], 1152  }
  0x1a   :  { %264 = vsyncadd [#allocation4], 4294966144 }
  0x1b   :  { %265 = dma.done.wait [#allocation7], 1152  }
  0x1c   :  { %266 = vsyncadd [#allocation7], 4294966144  ;;  %v45_v0 = vlaneseq  ;;  %v106_v30 = vld [vmem:[#allocation3] sm:$0xff]  ;;  %v107_v31 = vld [vmem:[#allocation3 + $0x8] sm:$0xff]  ;;  %s273_s0 = smov [#allocation8]  }
  0x1d   :  { %v108_v35 = vld [vmem:[#allocation3 + $0x10] sm:$0xff]  ;;  %v109_v36 = vld [vmem:[#allocation3 + $0x18] sm:$0xff]  ;;  %v115_v37 = vld [vmem:[#allocation6] sm:$0xff]  ;;  %s187_s1 = sshll.u32 %s273_s0, 4  ;;  %s188_s1 = int_to_ptr.vmem [resolvable:$true] %s187_s1 }
  0x1e   :  { %v46_v1 = vshrl.u32 %v45_v0, 7  ;;  %v56_v2 = vand.u32 127, %v45_v0  ;;  %v116_v39 = vld [vmem:[#allocation6 + $0x8] sm:$0xff]  ;;  %v117_v40 = vld [vmem:[#allocation6 + $0x10] sm:$0xff]  ;;  %v118_v41 = vld [vmem:[#allocation6 + $0x18] sm:$0xff]  ;;  %v124_v52 = vsub.f32 %v106_v30, %v115_v37  ;;  %s243_s21 = scalar_lea.vmem %s188_s1, 128  ;;  %p248_p11 = scmp.lt.s32.totalorder %s188_s1, %s188_s1 }
  0x1f   :  { %v110_v50 = vld [vmem:[#allocation3 + $0x20] sm:$0xff]  ;;  %v119_v51 = vld [vmem:[#allocation6 + $0x20] sm:$0xff]  ;;  %v125_v53 = vsub.f32 %v107_v31, %v116_v39  ;;  %v126_v55 = vsub.f32 %v108_v35, %v117_v40  ;;  %v127_v56 = vsub.f32 %v109_v36, %v118_v41  ;;  %v120_v59 = vld [vmem:[#allocation6 + $0x28] sm:$0xff]  ;;  %p244_p10 = scmp.ne.s32.totalorder %s188_s1, %s243_s21  ;;  %p249_p12 = scmp.lt.s32.totalorder %s243_s21, %s243_s21 }
  0x20   :  { %v47_v3 = vadd.s32 8, %v46_v1  ;;  %v48_v4 = vadd.s32 16, %v46_v1  ;;  %v49_v5 = vadd.s32 24, %v46_v1  ;;  %v50_v6 = vadd.s32 32, %v46_v1  ;;  %v111_v58 = vld [vmem:[#allocation3 + $0x28] sm:$0xff]  ;;  %v112_v0 = vld [vmem:[#allocation3 + $0x30] sm:$0xff] }
  0x21   :  { %v51_v7 = vadd.s32 40, %v46_v1  ;;  %v52_v8 = vadd.s32 48, %v46_v1  ;;  %v53_v9 = vadd.s32 56, %v46_v1  ;;  %v54_v10 = vadd.s32 64, %v46_v1  ;;  %p250_p13 = por %p249_p12, %p248_p11 }
  0x22   :  { %v57_v11 = vmul.u32 128, %v46_v1  ;;  %v58_v12 = vmul.u32 128, %v47_v3  ;;  %v121_v1 = vld [vmem:[#allocation6 + $0x30] sm:$0xff] }
  0x23   :  { %v59_v13 = vmul.u32 128, %v48_v4  ;;  %v60_v14 = vmul.u32 128, %v49_v5  ;;  %p251_p0 = pnand %p250_p13, %p244_p10 }
  0x24   :  { %v61_v15 = vmul.u32 128, %v50_v6  ;;  %v62_v16 = vmul.u32 128, %v51_v7  ;;  %v66_v17 = vadd.s32 %v57_v11, %v56_v2  ;;  %v67_v18 = vadd.s32 %v58_v12, %v56_v2 }
  0x25   :  { %v63_v19 = vmul.u32 128, %v52_v8  ;;  %v64_v20 = vmul.u32 128, %v53_v9  ;;  %v68_v21 = vadd.s32 %v59_v13, %v56_v2  ;;  %v69_v22 = vadd.s32 %v60_v14, %v56_v2  ;;  %v113_v8 = vld [vmem:[#allocation3 + $0x38] sm:$0xff]  ;;  %v122_v9 = vld [vmem:[#allocation6 + $0x38] sm:$0xff] }
  0x26   :  { %v65_v23 = vmul.u32 128, %v54_v10  ;;  %v70_v24 = vadd.s32 %v61_v15, %v56_v2  ;;  %v71_v25 = vadd.s32 %v62_v16, %v56_v2  ;;  %v75_v26 = vcvt.s32.f32 %v66_v17  ;;  %v114_v17 = vld [vmem:[#allocation3 + $0x40] sm:$0xff] }
  0x27   :  { %v72_v27 = vadd.s32 %v63_v19, %v56_v2  ;;  %v76_v28 = vcvt.s32.f32 %v67_v18  ;;  %v77_v29 = vcvt.s32.f32 %v68_v21  ;;  %v73_v32 = vadd.s32 %v64_v20, %v56_v2  ;;  %v123_v18 = vld [vmem:[#allocation6 + $0x40] sm:$0xff] }
  0x28   :  { %v78_v33 = vcvt.s32.f32 %v69_v22  ;;  %v79_v34 = vcvt.s32.f32 %v70_v24  ;;  %v80_v38 = vcvt.s32.f32 %v71_v25  ;;  %v74_v42 = vadd.s32 %v65_v23, %v56_v2 }
  0x29   :  { %v84_v43 = vmul.f32 0.00010851872, %v75_v26  ;;  %v85_v44 = vmul.f32 0.00010851872, %v76_v28  ;;  %v86_v45 = vmul.f32 0.00010851872, %v77_v29  ;;  %v81_v46 = vcvt.s32.f32 %v72_v27 }
  0x2a   :  { %v87_v47 = vmul.f32 0.00010851872, %v78_v33  ;;  %v88_v48 = vmul.f32 0.00010851872, %v79_v34  ;;  %v82_v49 = vcvt.s32.f32 %v73_v32  ;;  %v89_v54 = vmul.f32 0.00010851872, %v80_v38 }
  0x2b   :  { %v83_v57 = vcvt.s32.f32 %v74_v42  ;;  %v143_v60 = vadd.f32 1.0, %v84_v43  ;;  %v144_v61 = vadd.f32 1.0, %v85_v44  ;;  %v145_v62 = vadd.f32 1.0, %v86_v45 }
  0x2c   :  { %v90_v63 = vmul.f32 0.00010851872, %v81_v46  ;;  %v128_v2 = vsub.f32 %v110_v50, %v119_v51  ;;  %v146_v3 = vadd.f32 1.0, %v87_v47  ;;  %v147_v4 = vadd.f32 1.0, %v88_v48 }
  0x2d   :  { %v91_v5 = vmul.f32 0.00010851872, %v82_v49  ;;  %v152_v6 = vmul.f32 %v143_v60, %v124_v52  ;;  %v153_v7 = vmul.f32 %v144_v61, %v125_v53  ;;  %v129_v10 = vsub.f32 %v111_v58, %v120_v59 }
  0x2e   :  { %v148_v11 = vadd.f32 1.0, %v89_v54  ;;  %v154_v12 = vmul.f32 %v145_v62, %v126_v55  ;;  %v155_v13 = vmul.f32 %v146_v3, %v127_v56  ;;  %v92_v14 = vmul.f32 0.00010851872, %v83_v57 }
  0x2f   :  { %v130_v15 = vsub.f32 %v112_v0, %v121_v1  ;;  %v161_v16 = vmul.f32 %v152_v6, %v124_v52  ;;  %v149_v19 = vadd.f32 1.0, %v90_v63  ;;  %v156_v20 = vmul.f32 %v147_v4, %v128_v2 }
  0x30   :  { %v162_v21 = vmul.f32 %v153_v7, %v125_v53  ;;  %v163_v22 = vmul.f32 %v154_v12, %v126_v55  ;;  %v131_v23 = vsub.f32 %v113_v8, %v122_v9  ;;  %v150_v24 = vadd.f32 1.0, %v91_v5 }
  0x31   :  { %v157_v25 = vmul.f32 %v148_v11, %v129_v10  ;;  %v164_v26 = vmul.f32 %v155_v13, %v127_v56  ;;  %v132_v28 = vsub.f32 %v114_v17, %v123_v18  ;;  %v151_v29 = vadd.f32 1.0, %v92_v14 }
  0x32   :  { %v171_v27 = vadd.f32 %v162_v21, %v161_v16  ;;  %v158_v30 = vmul.f32 %v149_v19, %v130_v15  ;;  %v165_v31 = vmul.f32 %v156_v20, %v128_v2  ;;  %v159_v33 = vmul.f32 %v150_v24, %v131_v23 }
  0x33   :  { %v166_v34 = vmul.f32 %v157_v25, %v129_v10  ;;  %v160_v36 = vmul.f32 %v151_v29, %v132_v28 }
  0x34   :  { %v172_v32 = vadd.f32 %v171_v27, %v163_v22  ;;  %v167_v37 = vmul.f32 %v158_v30, %v130_v15  ;;  %v168_v39 = vmul.f32 %v159_v33, %v131_v23 }
  0x35   :  { %v169_v41 = vmul.f32 %v160_v36, %v132_v28 }
  0x36   :  { %v173_v35 = vadd.f32 %v172_v32, %v164_v26 }
  0x38   :  { %v174_v38 = vadd.f32 %v173_v35, %v165_v31 }
  0x3a   :  { %v175_v40 = vadd.f32 %v174_v38, %v166_v34 }
  0x3c   :  { %v176_v42 = vadd.f32 %v175_v40, %v167_v37 }
  0x3e   :  { %v177_v43 = vadd.f32 %v176_v42, %v168_v39 }
  0x40   :  { %v178_v44 = vadd.f32 %v177_v43, %v169_v41 }
  0x42   :  { %180 = vst [vmem:[#allocation8] sm:$0xff] %v178_v44 }
  0x43   :  { %254 = shalt.err (!%p251_p0)
}
  0x44   :  { %190 = dma.vmem_to_hbm [thread:$0]  %s188_s1, 128, %s300_s2, [#allocation5]  }
  0x45   :  { %267 = dma.done.wait [#allocation5], 128  }
  0x46   :  { %268 = vsyncadd [#allocation5], 4294967168 }
  0x47   :  { %194 = vsyncpa [#allocation4], 1 }
  0x48   :  { %195 = vsyncpa [#allocation7], 1 }
  0x49   :  { %196 = vsyncpa [#allocation5], 1 }

</bundles_post_ra>
